<compile_context>
chip_gen: v7x
topology: tpu7x:2x2x1
jax: 0.10.0
libtpu: 0.0.40
codegen_flags: <defaults>
</compile_context>

<pallas_src>
import jax
import jax.numpy as jnp
from jax.experimental import pallas as pl
from jax.experimental.pallas import tpu as pltpu


def _round_up(x, m):
    return (x + m - 1) // m * m


def _vmem_budget_bytes():
    """~75% of physical VMEM (96 MiB on v5e/v6e, 48 MiB on v7x)."""
    try:
        phys = int(pltpu.get_tpu_info().vmem_capacity_bytes)
    except Exception:  # capability query only; fall back to the smallest part
        phys = 64 * 1024 * 1024
    return (phys * 3) // 4


# --------------------------------------------------------------------------- #
# Kernel bodies
# --------------------------------------------------------------------------- #
def _make_resident_kernel(num_res):
    """Whole weight stack resident in VMEM; 1-D row-tiled grid over N."""

    def kernel(*refs):
        if num_res > 0:
            x_ref, w1_ref, wres_ref, o_ref = refs
        else:
            x_ref, w1_ref, o_ref = refs
        cdt = w1_ref.dtype

        # fc1 + ReLU: MXU matmul with f32 accumulation.
        h = jnp.maximum(
            jnp.dot(x_ref[...].astype(cdt), w1_ref[...],
                    preferred_element_type=jnp.float32),
            0.0)

        if num_res > 0:
            def res_step(l, h):
                wa = wres_ref[2 * l]          # (M_pad, M_pad)
                wb = wres_ref[2 * l + 1]
                t = jnp.maximum(
                    jnp.dot(h.astype(cdt), wa,
                            preferred_element_type=jnp.float32), 0.0)
                t = jnp.maximum(
                    jnp.dot(t.astype(cdt), wb,
                            preferred_element_type=jnp.float32), 0.0)
                return h + t

            if num_res >= 3:
                # fori_loop bounds live ranges (one weight slab / one t alive
                # at a time) and keeps compile time flat in num_res.
                h = jax.lax.fori_loop(0, num_res, res_step, h)
            else:
                for l in range(num_res):
                    h = res_step(l, h)

        o_ref[...] = h.astype(o_ref.dtype)

    return kernel


def _streaming_kernel(x_ref, w1_ref, wres_ref, o_ref, acc_ref):
    """One residual layer per grid step along axis 1; h in VMEM f32 scratch."""
    l = pl.program_id(1)
    cdt = w1_ref.dtype

    @pl.when(l == 0)
    def _():
        acc_ref[...] = jnp.maximum(
            jnp.dot(x_ref[...].astype(cdt), w1_ref[...],
                    preferred_element_type=jnp.float32), 0.0)

    @pl.when(l > 0)
    def _():
        h = acc_ref[...]
        t = jnp.maximum(
            jnp.dot(h.astype(cdt), wres_ref[0],
                    preferred_element_type=jnp.float32), 0.0)
        t = jnp.maximum(
            jnp.dot(t.astype(cdt), wres_ref[1],
                    preferred_element_type=jnp.float32), 0.0)
        acc_ref[...] = h + t

    @pl.when(l == pl.num_programs(1) - 1)
    def _():
        o_ref[...] = acc_ref[...].astype(o_ref.dtype)


# --------------------------------------------------------------------------- #
# Host-side wrappers
# --------------------------------------------------------------------------- #
def prepare_dim_reduction_weights(w1, wres=None, *, compute_dtype=jnp.bfloat16):
    """Pad + cast the weight stack ONCE (call at model init, not per forward).

    w1:   (C, M)  -- fc1.weight.T
    wres: (num_res, 2, M, M) with wres[i,0]/wres[i,1] the residual layer i
          weights (already transposed to (in, out)), or None.
    Use compute_dtype=jnp.float32 when exact-f32 numerics are required.
    """
    C, M = w1.shape
    C_pad, M_pad = _round_up(C, 128), _round_up(M, 128)
    w1_p = jnp.zeros((C_pad, M_pad), compute_dtype).at[:C, :M].set(
        w1.astype(compute_dtype))
    params = {"w1": w1_p, "C": C, "M": M}
    if wres is not None and wres.shape[0] > 0:
        num_res = wres.shape[0]
        flat = wres.reshape(2 * num_res, M, M)
        params["wres"] = jnp.zeros((2 * num_res, M_pad, M_pad),
                                   compute_dtype).at[:, :M, :M].set(
            flat.astype(compute_dtype))
    return params


def dim_reduction_pallas(x, params, *, tile_m=512, out_dtype=None,
                         force_streaming=False):
    """Forward pass. x: (N, C); params from prepare_dim_reduction_weights.
    out_dtype=jnp.bfloat16 halves output HBM writeback when the downstream
    attention module accepts bf16 (default: x.dtype, matching PyTorch)."""
    N, C = x.shape
    w1_p = params["w1"]
    C_pad, M_pad = w1_p.shape
    assert params["C"] == C, "x channel dim does not match prepared weights"
    M = params["M"]
    wres_p = params.get("wres")
    num_res = 0 if wres_p is None else wres_p.shape[0] // 2
    out_dtype = x.dtype if out_dtype is None else out_dtype

    w_isz = jnp.dtype(w1_p.dtype).itemsize
    o_isz = jnp.dtype(out_dtype).itemsize
    budget = _vmem_budget_bytes()

    # ---- row tile: >= 2 grid steps (v7x has 2 TensorCores), big tiles for
    # memory-bound large bags. ------------------------------------------------
    if N <= 64:
        tm = _round_up(max(N, 8), 8)            # tiny bag: single step
    elif N < 2 * tile_m:
        tm = _round_up(-(-N // 2), 16)          # two balanced steps
    else:
        tm = tile_m

    # ---- VMEM accounting (incl. cast temporaries / live weight slabs) -------
    def estimate(tm_, streaming_, x_isz_):
        act = 2 * tm_ * C_pad * x_isz_ + 2 * tm_ * M_pad * o_isz  # pipelined tiles
        if streaming_:
            w = 2 * (C_pad * M_pad + 2 * M_pad * M_pad) * w_isz   # per-step weights
            scratch = tm_ * M_pad * 4                             # h accumulator
        else:
            w = 2 * (C_pad * M_pad + 2 * num_res * M_pad * M_pad) * w_isz
            scratch = 0
        temps = (3 * tm_ * M_pad * 4            # f32 h / t live values
                 + 2 * tm_ * M_pad * w_isz      # bf16 cast copies of h / t
                 + 2 * M_pad * M_pad * w_isz)   # live weight-slab copies
        return w + act + scratch + temps

    x_isz = jnp.dtype(x.dtype).itemsize
    streaming = num_res > 0 and (
        force_streaming or estimate(tm, False, x_isz) > budget)
    while estimate(tm, streaming, x_isz) > budget and tm > 64:
        tm = max(64, _round_up(tm // 2, 16))

    N_pad = _round_up(N, tm)
    rows = N_pad // tm

    # ---- x: skip the pad/copy when already aligned (cast happens in-kernel) -
    if N_pad == N and C_pad == C:
        x_in = x
    else:
        x_in = jnp.zeros((N_pad, C_pad), w1_p.dtype).at[:N, :C].set(
            x.astype(w1_p.dtype))

    est = estimate(tm, streaming, jnp.dtype(x_in.dtype).itemsize)
    vmem_limit = int(min(max(est * 5 // 4, 32 * 1024 * 1024), budget))

    out_shape = jax.ShapeDtypeStruct((N_pad, M_pad), out_dtype)

    if not streaming:
        in_specs = [pl.BlockSpec((tm, C_pad), lambda i: (i, 0)),
                    pl.BlockSpec((C_pad, M_pad), lambda i: (0, 0))]
        args = [x_in, w1_p]
        if num_res > 0:
            in_specs.append(pl.BlockSpec((2 * num_res, M_pad, M_pad),
                                         lambda i: (0, 0, 0)))
            args.append(wres_p)
        out = pl.pallas_call(
            _make_resident_kernel(num_res),
            out_shape=out_shape,
            grid_spec=pltpu.PrefetchScalarGridSpec(
                num_scalar_prefetch=0,
                grid=(rows,),
                in_specs=in_specs,
                out_specs=pl.BlockSpec((tm, M_pad), lambda i: (i, 0)),
            ),
            compiler_params=pltpu.CompilerParams(
                dimension_semantics=("parallel",),
                vmem_limit_bytes=vmem_limit,
            ),
        )(*args)
    else:
        out = pl.pallas_call(
            _streaming_kernel,
            out_shape=out_shape,
            grid_spec=pltpu.PrefetchScalarGridSpec(
                num_scalar_prefetch=0,
                grid=(rows, num_res + 1),
                in_specs=[
                    pl.BlockSpec((tm, C_pad), lambda i, l: (i, 0)),
                    pl.BlockSpec((C_pad, M_pad), lambda i, l: (0, 0)),
                    # layer l (>=1) uses weight pair l-1; the l==0 prefetch of
                    # pair 0 is reused at l==1 (same block index, no re-DMA).
                    pl.BlockSpec((2, M_pad, M_pad),
                                 lambda i, l: (jnp.maximum(l - 1, 0), 0, 0)),
                ],
                out_specs=pl.BlockSpec((tm, M_pad), lambda i, l: (i, 0)),
                scratch_shapes=[pltpu.VMEM((tm, M_pad), jnp.float32)],
            ),
            compiler_params=pltpu.CompilerParams(
                dimension_semantics=("parallel", "arbitrary"),
                vmem_limit_bytes=vmem_limit,
            ),
        )(x_in, w1_p, wres_p)

    return out[:N, :M]


def dim_reduction_ref(x, w1, wres=None):
    """Plain-JAX f32 reference matching the PyTorch forward."""
    h = jnp.maximum(x @ w1, 0.0)
    if wres is not None:
        for i in range(wres.shape[0]):
            t = jnp.maximum(h @ wres[i, 0], 0.0)
            t = jnp.maximum(t @ wres[i, 1], 0.0)
            h = h + t
    return h


if __name__ == "__main__":
    key = jax.random.PRNGKey(0)
    kx, kw1, kres = jax.random.split(key, 3)

    # Small DTFD-like shapes: a ragged bag of N=200 instances, 192 input
    # channels (exercises 128-lane padding + 2-step row grid), m_dim=256,
    # three residual blocks (exercises the fori_loop layer path).
    N, n_channels, m_dim, num_res = 200, 192, 256, 3

    x = jax.random.normal(kx, (N, n_channels), dtype=jnp.float32)
    # Weights stored as (in, out), i.e. nn.Linear.weight.T
    w1 = jax.random.normal(kw1, (n_channels, m_dim), dtype=jnp.float32) * 0.05
    wres = jax.random.normal(kres, (num_res, 2, m_dim, m_dim),
                             dtype=jnp.float32) * 0.02

    # Pad/cast weights ONCE (model init), never per call.
    params_res = prepare_dim_reduction_weights(w1, wres)
    params_fc1 = prepare_dim_reduction_weights(w1)          # numLayer_Res = 0

    expected_fc1 = dim_reduction_ref(x, w1)
    expected_res = dim_reduction_ref(x, w1, wres)

    # 1) default DTFD config (numLayer_Res=0), resident path.
    out0 = jax.block_until_ready(dim_reduction_pallas(x, params_fc1))
    # 2) residual stack, resident path (lax.fori_loop over layers).
    out1 = jax.block_until_ready(dim_reduction_pallas(x, params_res))
    # 3) same weights through the layer-streaming path (v7x big-weight fallback).
    out2 = jax.block_until_ready(
        dim_reduction_pallas(x, params_res, force_streaming=True))

    assert out0.shape == (N, m_dim)
    assert out1.shape == (N, m_dim)
    assert out2.shape == (N, m_dim)

    # bf16 operands with f32 MXU accumulation vs an f32 reference.
    assert jnp.allclose(out0, expected_fc1, atol=5e-2, rtol=5e-2), \
        float(jnp.max(jnp.abs(out0 - expected_fc1)))
    assert jnp.allclose(out1, expected_res, atol=5e-2, rtol=5e-2), \
        float(jnp.max(jnp.abs(out1 - expected_res)))
    assert jnp.allclose(out2, expected_res, atol=5e-2, rtol=5e-2), \
        float(jnp.max(jnp.abs(out2 - expected_res)))

    print("KERNEL_OK")
</pallas_src>

<mosaic_0001>
module attributes {stable_mosaic.version = 11 : i64} {
  func.func @kernel(%arg0: i32, %arg1: memref<112x256xbf16, #tpu.memory_space<vmem>>, %arg2: memref<256x256xbf16, #tpu.memory_space<vmem>>, %arg3: memref<112x256xf32, #tpu.memory_space<vmem>>) attributes {dimension_semantics = [#tpu.dimension_semantics<parallel>], iteration_bounds = array<i64: 2>, scalar_prefetch = 0 : i64, scratch_operands = 0 : i64, tpu.core_type = #tpu.core_type<tc>, window_params = [{transform_indices = @transform_0, window_bounds = array<i64: 112, 256>}, {pipeline_mode = #tpu.pipeline_mode<synchronous>, transform_indices = @transform_1, window_bounds = array<i64: 256, 256>}, {transform_indices = @transform_2, window_bounds = array<i64: 112, 256>}]} {
    %c0 = arith.constant 0 : index
    %c0_0 = arith.constant 0 : index
    %0 = vector.load %arg1[%c0, %c0_0] : memref<112x256xbf16, #tpu.memory_space<vmem>>, vector<112x256xbf16>
    %c0_1 = arith.constant 0 : index
    %c0_2 = arith.constant 0 : index
    %1 = vector.load %arg2[%c0_1, %c0_2] : memref<256x256xbf16, #tpu.memory_space<vmem>>, vector<256x256xbf16>
    %cst = arith.constant dense<0.000000e+00> : vector<112x256xf32>
    %2 = tpu.matmul %0, %1, %cst {dimension_numbers = #tpu.dot_dimension_numbers<[1], [0], [0], [1], [0, 0, 1, 1], [], []>} : vector<112x256xbf16>, vector<256x256xbf16>, vector<112x256xf32> -> vector<112x256xf32>
    %cst_3 = arith.constant 0.000000e+00 : f32
    %3 = vector.broadcast %cst_3 : f32 to vector<112x256xf32>
    %4 = arith.maximumf %2, %3 : vector<112x256xf32>
    %c0_4 = arith.constant 0 : index
    %c0_5 = arith.constant 0 : index
    %5 = vector.load %arg3[%c0_4, %c0_5] : memref<112x256xf32, #tpu.memory_space<vmem>>, vector<112x256xf32>
    tpu.vector_store %arg3[%c0_4, %c0_5], %4 {strides = array<i32>} : memref<112x256xf32, #tpu.memory_space<vmem>>, vector<112x256xf32>,
    return
  }
  func.func @transform_0(%arg0: i32) -> (i32, i32) {
    %c0_i32 = arith.constant 0 : i32
    %c0_i32_0 = arith.constant 0 : i32
    return %arg0, %c0_i32 : i32, i32
  }
  func.func @transform_1(%arg0: i32) -> (i32, i32) {
    %c0_i32 = arith.constant 0 : i32
    %c0_i32_0 = arith.constant 0 : i32
    %c0_i32_1 = arith.constant 0 : i32
    return %c0_i32, %c0_i32_0 : i32, i32
  }
  func.func @transform_2(%arg0: i32) -> (i32, i32) {
    %c0_i32 = arith.constant 0 : i32
    %c0_i32_0 = arith.constant 0 : i32
    return %arg0, %c0_i32 : i32, i32
  }
}

</mosaic_0001>

<bundles_post_ra>
// kernel: tpu_custom_call.1
= control target key start
LH: loop header
LB: loop body
LE: loop exit
PB: predicated region body
PF: predicated region fallthrough
CT: control target
= control target key end

     0   :  { %7 = vsyncpa [#allocation3], 0  ;;  %s1349_s0 = inlined_call_operand.hbm [shape: bf16[224,256], index: 0, kind: input, shape index: {}]   ;;  %s1350_s1 = inlined_call_operand.hbm [shape: bf16[256,256], index: 1, kind: input, shape index: {}]   ;;  %s1351_s2 = inlined_call_operand.hbm [shape: f32[224,256], index: 2, kind: output, shape index: {}]  }
   0x1   :  { %9 = vsyncpa [#allocation3 + $0x1], 0 }
   0x2   :  { %10 = vsyncpa [#allocation6], 0 }
   0x3   :  { %11 = vsyncpa [#allocation4], 0 }
   0x4   :  { %13 = vsyncpa [#allocation4 + $0x1], 0  ;;  %s1094_s9 = smov 0   ;;  %s1096_s10 = smov 0  }
   0x5   :  { %s1098_s11 = smov 0   ;;  %s1100_s12 = smov 0  }
   0x6 LB: > { %s1115_s13 = sadd.s32 4294967295, %s1070_s12   ;;  %s713_s14 = sadd.s32 4294967294, %s1070_s12   ;;  %s1070_s12 = sphi %s1100_s12, %s1371_s12   ;;  %s1066_s11 = sphi %s1098_s11, %s1370_s11   ;;  %s1062_s10 = sphi %s1096_s10, %s1369_s10   ;;  %s1058_s9 = sphi %s1094_s9, %s1368_s9  }
   0x7   : > { %p39_p0 = scmp.ne.s32.totalorder %s1062_s10, %s1058_s9  ;;  %p1352_p1 = scmp.eq.s32.totalorder %s1115_s13, 0 }
   0x8   : > { %p90_p3 = scmp.eq.s32.totalorder %s713_s14, 1  ;;  %p714_p5 = scmp.ge.s32.totalorder %s1070_s12, 1 }
   0x9   : > { %p1124_p4 = por %p1352_p1, %p39_p0  ;;  %p97_p7 = scmp.lt.s32.totalorder %s1070_s12, 3 }
   0xa   : > { %p1129_p6 = por %p90_p3, %p39_p0  ;;  %s1072_s18 = smov [#allocation5]  }
   0xb   : > { %s1355_s15 = scalar_select %p1124_p4, 1, 0 }
   0xc   : > { %s1356_s16 = scalar_select %p1129_p6, 1, 0 }
   0xd   : > { %p1134_p8 = pnand %p714_p5, %p97_p7  ;;  %s109_s19 = sshll.u32 %s1072_s18, 4  ;;  %s1138_s19 = int_to_ptr.vmem [resolvable:$true] %s109_s19 }
   0xe   : > { %s1150_s21 = sadd.s32 1, %s1070_s12   ;;  %s26_s22 = sadd.s32 1, %s1066_s11 }
   0xf   : > { %s1357_s17 = scalar_select %p1134_p8, 1, 0 }
  0x10   : > { %p820_p9 = pneg %p1134_p8  ;;  %s23_s23 = ssub.s32 %s1070_s12, %s1150_s21 }
  0x11   : > { %s942_s26 = scalar_lea.hbm %s1350_s1, 4096 }
  0x12   : > { %p1145_p11 = pnand %p820_p9, %p1352_p1  ;;  %p943_p12 = scmp.ne.s32.totalorder %s1350_s1, %s942_s26 }
  0x13   : > { %p949_p5 = scmp.lt.u32.totalorder %s942_s26, %s1350_s1 }
  0x14   : > { %p944_p13 = pneg %p1145_p11 }
  0x16   : > { %p945_p0 = pnand %p944_p13, %p943_p12 }
  0x18   : > { %p946_p3 = pneg %p945_p0 }
  0x1a   : > { %p951_p7 = pnand %p949_p5, %p946_p3 }
  0x1c   : > { %954 = shalt.err (!%p951_p7)
}
  0x1d   : > { %s955_s3 = scalar_lea.vmem %s1138_s19, 4096  ;;  %p963_p2 = scmp.lt.s32.totalorder %s1138_s19, %s1138_s19 }
  0x1e   : > { %p956_p9 = scmp.ne.s32.totalorder %s1138_s19, %s955_s3  ;;  %p964_p6 = scmp.lt.s32.totalorder %s955_s3, %s955_s3 }
  0x20   : > { %p958_p10 = pnand %p956_p9, %p944_p13  ;;  %p965_p4 = por %p964_p6, %p963_p2 }
  0x22   : > { %p959_p1 = pneg %p958_p10 }
  0x24   : > { %p966_p8 = pnand %p965_p4, %p959_p1 }
  0x26   : > { %969 = shalt.err (!%p966_p8)
}
  0x27   : > { %s1073_s4 = smov 128   ;;  %s1074_s5 = smov 8  }
  0x28   : > { %823 = dma.hbm_to_vmem [thread:$0]  (!%p1145_p11), %s1350_s1, 4096, %s1138_s19, [#allocation6], %s1073_s4, %s1073_s4, %s1074_s5  }
  0x29   : > { %p24_p1 = scmp.eq.s32.totalorder %s23_s23, 0  ;;  %p33_p2 = scmp.ne.s32.totalorder %s1066_s11, %s1062_s10 }
  0x2a   : > { %p34_p4 = scmp.eq.s32.totalorder %s1070_s12, 0  ;;  %p833_p6 = scmp.lt.s32.totalorder %s1070_s12, 2 }
  0x2b   : > { %s1184_s8 = scalar_select %p24_p1, %s1066_s11, %s26_s22  }
  0x2c   : > { %p35_p8 = por %p34_p4, %p33_p2  ;;  %p1359_p10 = scmp.eq.s32.totalorder %s1115_s13, 1 }
  0x2d   : > { %s123_s18 = sand.u32 1, %s1066_s11   ;;  %s775_s20 = smul.u32 1792, %s1070_s12 }
  0x2e   : > { %p1188_p12 = por %p1359_p10, %p33_p2  ;;  %s809_s24 = smul.u32 112, %s123_s18 }
  0x2f   : > { %p1194_p13 = pnand %p833_p6, %p35_p8  ;;  %s1201_s22 = scalar_lea.hbm %s1349_s0, %s775_s20 }
  0x30   : > { %s127_s26 = scalar_lea.vmem [#allocation2], %s809_s24  ;;  %s1205_s28 = scalar_lea.sflag [#allocation3], %s123_s18 }
  0x31   : > { %s135_s27 = sshll.u32 %s127_s26, 4  ;;  %s970_s29 = scalar_lea.hbm %s1201_s22, 1792  ;;  %s1203_s27 = int_to_ptr.vmem [resolvable:$true] %s135_s27 }
  0x32   : > { %p971_p11 = scmp.ne.s32.totalorder %s1201_s22, %s970_s29  ;;  %p972_p0 = pneg %p1194_p13 }
  0x33   : > { %s975_s6 = scalar_lea.hbm %s1349_s0, 3584  ;;  %p976_p7 = scmp.lt.u32.totalorder %s1201_s22, %s1349_s0 }
  0x34   : > { %p973_p3 = pnand %p972_p0, %p971_p11  ;;  %p977_p9 = scmp.lt.u32.totalorder %s975_s6, %s970_s29 }
  0x35   : > { %p979_p2 = scmp.lt.u32.totalorder %s970_s29, %s1201_s22 }
  0x36   : > { %p974_p5 = pneg %p973_p3  ;;  %p978_p1 = por %p977_p9, %p976_p7 }
  0x38   : > { %p980_p4 = por %p979_p2, %p978_p1 }
  0x3a   : > { %p981_p6 = pnand %p980_p4, %p974_p5 }
  0x3c   : > { %984 = shalt.err (!%p981_p6)
}
  0x3d   : > { %s985_s18 = scalar_lea.vmem %s1203_s27, 1792  ;;  %s1075_s24 = smov [#allocation2]  }
  0x3e   : > { %p986_p8 = scmp.ne.s32.totalorder %s1203_s27, %s985_s18  ;;  %s990_s19 = sshll.u32 %s1075_s24, 4  ;;  %s991_s19 = int_to_ptr.vmem [resolvable:$false] %s990_s19 }
  0x3f   : > { %s992_s23 = scalar_lea.vmem %s991_s19, 3584  ;;  %p993_p3 = scmp.lt.s32.totalorder %s1203_s27, %s991_s19 }
  0x40   : > { %p988_p10 = pnand %p986_p8, %p972_p0  ;;  %p994_p7 = scmp.lt.s32.totalorder %s992_s23, %s985_s18 }
  0x42   : > { %p989_p11 = pneg %p988_p10  ;;  %p995_p9 = por %p994_p7, %p993_p3 }
  0x44   : > { %p996_p1 = pnand %p995_p9, %p989_p11 }
  0x46   : > { %999 = shalt.err (!%p996_p1)
}
  0x47   : > { %827 = dma.hbm_to_vmem [thread:$0]  (!%p1194_p13), %s1201_s22, 1792, %s1203_s27, %s1205_s28, %s1073_s4, %s1073_s4, %s1074_s5  }
  0x48   : > { %p1362_p0 = scmp.ne.s32.totalorder %s1357_s17, 0 }
  0x49   : > { %s1239_s26 = sand.u32 (!%p1362_p0), 1, %s1062_s10   ;;  %p1363_p5 = scmp.ne.s32.totalorder (!%p1362_p0), %s1355_s15, 0 }
  0x4a   : > { %147 = sbr.rel (%p1362_p0) target bundleno = 406 (0x196), region = 28  ;;  %s150_s30 = scalar_lea.sflag (!%p1362_p0), [#allocation3], %s1239_s26 }
  0x4b   : > { %s810_s29 = smul.u32 (!%p1362_p0), 112, %s1239_s26 }
  0x4d   : > { %s1243_s3 = scalar_lea.vmem (!%p1362_p0), [#allocation2], %s810_s29 }
  0x51   : > { %1045 = dma.done.wait (%p1363_p5), %s150_s30, 1792  }
  0x52   : > { %1047 = vsyncadd (%p1363_p5), %s150_s30, 4294965504  ;;  %p1364_p13 = scmp.eq.s32.totalorder %s1115_s13, 0 }
  0x54   : > { %1049 = dma.done.wait (%p1364_p13), [#allocation6], 4096   ;;  %p1365_p2 = pmov %p1364_p13 }
  0x55   : > { %v873_v0 = vld [vmem:[#allocation5 + $0x4] ss:$8 sps:$4 sm:$0xff]   ;;  %v875_v1 = vld [vmem:[#allocation5] ss:$8 sps:$4 sm:$0xff]   ;;  %v876_v2 = vld [vmem:[#allocation5 + $0x14] ss:$8 sps:$4 sm:$0xff]  }
  0x56   : > { %1051 = vsyncadd (%p1365_p2), [#allocation6], 4294963200  ;;  %456 = vmatprep.subr.bf16.mxu0 %v873_v0  ;;  %777 = vmatprep.subr.bf16.mxu1 %v873_v0  ;;  %v878_v3 = vld [vmem:[#allocation5 + $0x10] ss:$8 sps:$4 sm:$0xff]   ;;  %v879_v4 = vld [vmem:[#allocation5 + $0x24] ss:$8 sps:$4 sm:$0xff]  }
  0x57   : > { %457 = vmatpush1.bf16.msra.mxu0 %v875_v1  ;;  %793 = vmatpush1.bf16.msra.mxu1 %v875_v1  ;;  %v881_v5 = vld [vmem:[#allocation5 + $0x20] ss:$8 sps:$4 sm:$0xff]   ;;  %v882_v6 = vld [vmem:[#allocation5 + $0x34] ss:$8 sps:$4 sm:$0xff]   ;;  %v884_v7 = vld [vmem:[#allocation5 + $0x30] ss:$8 sps:$4 sm:$0xff]  }
  0x58   : > { %458 = vmatprep.subr.bf16.mxu0 %v876_v2  ;;  %778 = vmatprep.subr.bf16.mxu1 %v876_v2  ;;  %v885_v8 = vld [vmem:[#allocation5 + $0x44] ss:$8 sps:$4 sm:$0xff]   ;;  %v887_v9 = vld [vmem:[#allocation5 + $0x40] ss:$8 sps:$4 sm:$0xff]   ;;  %v888_v10 = vld [vmem:[#allocation5 + $0x54] ss:$8 sps:$4 sm:$0xff]  }
  0x59   : > { %v890_v11 = vld [vmem:[#allocation5 + $0x50] ss:$8 sps:$4 sm:$0xff]   ;;  %v891_v12 = vld [vmem:[#allocation5 + $0x64] ss:$8 sps:$4 sm:$0xff]   ;;  %v893_v14 = vld [vmem:[#allocation5 + $0x60] ss:$8 sps:$4 sm:$0xff]  }
  0x5a   : > { %v923_v13 = vld [vmem:[%s1243_s3 + $0x4] ss:$8 sps:$4 sm:$0xff]   ;;  %v896_v17 = vld [vmem:[#allocation5 + $0x70] ss:$8 sps:$4 sm:$0xff]   ;;  %v899_v19 = vld [vmem:[#allocation5 + $0x80] ss:$8 sps:$4 sm:$0xff]  }
  0x5b   : > { %459 = vmatpush1.bf16.msra.mxu0 %v878_v3  ;;  %794 = vmatpush1.bf16.msra.mxu1 %v878_v3  ;;  %v926_v15 = vld [vmem:[%s1243_s3 + $0x44] ss:$8 sps:$4 sm:$0xff]   ;;  %v902_v21 = vld [vmem:[#allocation5 + $0x90] ss:$8 sps:$4 sm:$0xff]   ;;  %v905_v23 = vld [vmem:[#allocation5 + $0xa0] ss:$8 sps:$4 sm:$0xff]  }
  0x5c   : > { %460 = vmatprep.subr.bf16.mxu0 %v879_v4  ;;  %779 = vmatprep.subr.bf16.mxu1 %v879_v4  ;;  %v894_v16 = vld [vmem:[#allocation5 + $0x74] ss:$8 sps:$4 sm:$0xff]   ;;  %v897_v18 = vld [vmem:[#allocation5 + $0x84] ss:$8 sps:$4 sm:$0xff]   ;;  %v908_v25 = vld [vmem:[#allocation5 + $0xb0] ss:$8 sps:$4 sm:$0xff]  }
  0x5d   : > { %488 = vmatprep.mubr.bf16.mxu0 %v923_v13  ;;  %528 = vmatprep.mubr.bf16.mxu1 %v926_v15  ;;  %v900_v20 = vld [vmem:[#allocation5 + $0x94] ss:$8 sps:$4 sm:$0xff]   ;;  %v903_v22 = vld [vmem:[#allocation5 + $0xa4] ss:$8 sps:$4 sm:$0xff]   ;;  %v911_v27 = vld [vmem:[#allocation5 + $0xc0] ss:$8 sps:$4 sm:$0xff]  }
  0x5e   : > { %v906_v24 = vld [vmem:[#allocation5 + $0xb4] ss:$8 sps:$4 sm:$0xff]   ;;  %v909_v26 = vld [vmem:[#allocation5 + $0xc4] ss:$8 sps:$4 sm:$0xff]   ;;  %v914_v29 = vld [vmem:[#allocation5 + $0xd0] ss:$8 sps:$4 sm:$0xff]  }
  0x5f   : > { %461 = vmatpush1.bf16.msra.mxu0 %v881_v5  ;;  %795 = vmatpush1.bf16.msra.mxu1 %v881_v5  ;;  %v912_v28 = vld [vmem:[#allocation5 + $0xd4] ss:$8 sps:$4 sm:$0xff]   ;;  %v915_v30 = vld [vmem:[#allocation5 + $0xe4] ss:$8 sps:$4 sm:$0xff]   ;;  %v917_v31 = vld [vmem:[#allocation5 + $0xe0] ss:$8 sps:$4 sm:$0xff]  }
  0x60   : > { %462 = vmatprep.subr.bf16.mxu0 %v882_v6  ;;  %780 = vmatprep.subr.bf16.mxu1 %v882_v6  ;;  %v918_v32 = vld [vmem:[#allocation5 + $0xf4] ss:$8 sps:$4 sm:$0xff]   ;;  %v920_v33 = vld [vmem:[#allocation5 + $0xf0] ss:$8 sps:$4 sm:$0xff]   ;;  %s811_s15 = smul.u32 224, %s1239_s26  ;;  %s1076_s6 = smov [#allocation7]  }
  0x61   : > { %v921_v34 = vld [vmem:[%s1243_s3] ss:$8 sps:$4 sm:$0xff]   ;;  %v927_v36 = vld [vmem:[%s1243_s3 + $0x14] ss:$8 sps:$4 sm:$0xff]   ;;  %v929_v38 = vld [vmem:[%s1243_s3 + $0x10] ss:$8 sps:$4 sm:$0xff]  }
  0x62   : > { %v924_v35 = vld [vmem:[%s1243_s3 + $0x40] ss:$8 sps:$4 sm:$0xff]   ;;  %v930_v37 = vld [vmem:[%s1243_s3 + $0x54] ss:$8 sps:$4 sm:$0xff]   ;;  %v932_v39 = vld [vmem:[%s1243_s3 + $0x50] ss:$8 sps:$4 sm:$0xff]  }
  0x63   : > { %463 = vmatpush1.bf16.msra.mxu0 %v884_v7  ;;  %796 = vmatpush1.bf16.msra.mxu1 %v884_v7  ;;  %v933_v40 = vld [vmem:[%s1243_s3 + $0x24] ss:$8 sps:$4 sm:$0xff]   ;;  %v935_v42 = vld [vmem:[%s1243_s3 + $0x20] ss:$8 sps:$4 sm:$0xff]   ;;  %v939_v44 = vld [vmem:[%s1243_s3 + $0x34] ss:$8 sps:$4 sm:$0xff]  }
  0x64   : > { %464 = vmatprep.subr.bf16.mxu0 %v885_v8  ;;  %781 = vmatprep.subr.bf16.mxu1 %v885_v8  ;;  %v936_v41 = vld [vmem:[%s1243_s3 + $0x64] ss:$8 sps:$4 sm:$0xff]   ;;  %v938_v43 = vld [vmem:[%s1243_s3 + $0x60] ss:$8 sps:$4 sm:$0xff]   ;;  %v941_v45 = vld [vmem:[%s1243_s3 + $0x30] ss:$8 sps:$4 sm:$0xff]  }
  0x65   : > { %s1268_s17 = scalar_lea.vmem [#allocation7], %s811_s15  ;;  %s776_s4 = smul.u32 3584, %s1115_s13 }
  0x66   : > { %s630_s5 = sshll.u32 %s1268_s17, 4  ;;  %s616_s13 = scalar_lea.sflag [#allocation4], %s1239_s26  ;;  %s1302_s5 = int_to_ptr.vmem [resolvable:$true] %s630_s5 }
  0x67   : > { %465 = vmatpush1.bf16.msra.mxu0 %v887_v9  ;;  %797 = vmatpush1.bf16.msra.mxu1 %v887_v9  ;;  %s1300_s27 = scalar_lea.hbm %s1351_s2, %s776_s4  ;;  %s1000_s28 = scalar_lea.vmem %s1302_s5, 3584 }
  0x68   : > { %466 = vmatprep.subr.bf16.mxu0 %v888_v10  ;;  %782 = vmatprep.subr.bf16.mxu1 %v888_v10  ;;  %p1001_p4 = scmp.ne.s32.totalorder %s1302_s5, %s1000_s28  ;;  %s1004_s7 = sshll.u32 %s1076_s6, 4  ;;  %s1005_s7 = int_to_ptr.vmem [resolvable:$false] %s1004_s7 }
  0x69   : > { %s1006_s20 = scalar_lea.vmem %s1005_s7, 7168  ;;  %p1007_p10 = scmp.lt.s32.totalorder %s1302_s5, %s1005_s7 }
  0x6a   : > { %p1002_p6 = pnand %p1001_p4, %p1188_p12  ;;  %p1008_p11 = scmp.lt.s32.totalorder %s1006_s20, %s1000_s28 }
  0x6b   : > { %467 = vmatpush1.bf16.msra.mxu0 %v890_v11  ;;  %798 = vmatpush1.bf16.msra.mxu1 %v890_v11 }
  0x6c   : > { %468 = vmatprep.subr.bf16.mxu0 %v891_v12  ;;  %783 = vmatprep.subr.bf16.mxu1 %v891_v12  ;;  %p1003_p8 = pneg %p1002_p6  ;;  %p1009_p3 = por %p1008_p11, %p1007_p10 }
  0x6e   : > { %p1010_p7 = pnand %p1009_p3, %p1003_p8 }
  0x6f   : > { %469 = vmatpush1.bf16.msra.mxu0 %v893_v14  ;;  %799 = vmatpush1.bf16.msra.mxu1 %v893_v14 }
  0x70   : > { %470 = vmatprep.subr.bf16.mxu0 %v894_v16  ;;  %784 = vmatprep.subr.bf16.mxu1 %v894_v16 }
  0x73   : > { %471 = vmatpush1.bf16.msra.mxu0 %v896_v17  ;;  %800 = vmatpush1.bf16.msra.mxu1 %v896_v17 }
  0x74   : > { %472 = vmatprep.subr.bf16.mxu0 %v897_v18  ;;  %785 = vmatprep.subr.bf16.mxu1 %v897_v18 }
  0x77   : > { %473 = vmatpush1.bf16.msra.mxu0 %v899_v19  ;;  %801 = vmatpush1.bf16.msra.mxu1 %v899_v19 }
  0x78   : > { %474 = vmatprep.subr.bf16.mxu0 %v900_v20  ;;  %786 = vmatprep.subr.bf16.mxu1 %v900_v20 }
  0x7b   : > { %475 = vmatpush1.bf16.msra.mxu0 %v902_v21  ;;  %802 = vmatpush1.bf16.msra.mxu1 %v902_v21 }
  0x7c   : > { %476 = vmatprep.subr.bf16.mxu0 %v903_v22  ;;  %787 = vmatprep.subr.bf16.mxu1 %v903_v22 }
  0x7f   : > { %477 = vmatpush1.bf16.msra.mxu0 %v905_v23  ;;  %803 = vmatpush1.bf16.msra.mxu1 %v905_v23 }
  0x80   : > { %478 = vmatprep.subr.bf16.mxu0 %v906_v24  ;;  %788 = vmatprep.subr.bf16.mxu1 %v906_v24 }
  0x83   : > { %479 = vmatpush1.bf16.msra.mxu0 %v908_v25  ;;  %804 = vmatpush1.bf16.msra.mxu1 %v908_v25 }
  0x84   : > { %480 = vmatprep.subr.bf16.mxu0 %v909_v26  ;;  %789 = vmatprep.subr.bf16.mxu1 %v909_v26 }
  0x87   : > { %481 = vmatpush1.bf16.msra.mxu0 %v911_v27  ;;  %805 = vmatpush1.bf16.msra.mxu1 %v911_v27 }
  0x88   : > { %482 = vmatprep.subr.bf16.mxu0 %v912_v28  ;;  %790 = vmatprep.subr.bf16.mxu1 %v912_v28 }
  0x8b   : > { %483 = vmatpush1.bf16.msra.mxu0 %v914_v29  ;;  %806 = vmatpush1.bf16.msra.mxu1 %v914_v29 }
  0x8c   : > { %484 = vmatprep.subr.bf16.mxu0 %v915_v30  ;;  %791 = vmatprep.subr.bf16.mxu1 %v915_v30 }
  0x8f   : > { %485 = vmatpush1.bf16.msra.mxu0 %v917_v31  ;;  %807 = vmatpush1.bf16.msra.mxu1 %v917_v31 }
  0x90   : > { %486 = vmatprep.subr.bf16.mxu0 %v918_v32  ;;  %792 = vmatprep.subr.bf16.mxu1 %v918_v32 }
  0x93   : > { %487 = vmatpush1.bf16.msra.mxu0 %v920_v33  ;;  %808 = vmatpush1.bf16.msra.mxu1 %v920_v33 }
  0x96   : > { %489 = vmatmul.mubr.bf16.vlgmr.msra.gmra.mrb[0].mxu0 %v921_v34  ;;  %529 = vmatmul.mubr.bf16.vlgmr.msra.gmra.mrb[0].mxu1 %v924_v35 }
  0x97   : > { %498 = vmatprep.mubr.bf16.mxu0 %v927_v36  ;;  %538 = vmatprep.mubr.bf16.mxu1 %v930_v37 }
  0x9e   : > { %499 = vmatmul.mubr.bf16.gmra.mrb[4].mxu0 %v929_v38  ;;  %539 = vmatmul.mubr.bf16.gmra.mrb[4].mxu1 %v932_v39 }
  0x9f   : > { %508 = vmatprep.mubr.bf16.mxu0 %v933_v40  ;;  %548 = vmatprep.mubr.bf16.mxu1 %v936_v41 }
  0xa6   : > { %509 = vmatmul.mubr.bf16.gmra.mrb[8].mxu0 %v935_v42  ;;  %549 = vmatmul.mubr.bf16.gmra.mrb[8].mxu1 %v938_v43 }
  0xa7   : > { %518 = vmatprep.mubr.bf16.mxu0 %v939_v44 }
  0xae   : > { %519 = vmatmul.mubr.bf16.gmra.mrb[12].mxu0 %v941_v45 }
 0x169   : > { %v490_v46 = vpop.f32.mrb[0].mxu0  ;;  %v530_v47 = vpop.f32.mrb[0].mxu1 }
 0x16a   : > { %v559_v48 = vmax.f32 %v490_v46, 0.0  ;;  %v492_v49 = vpop.f32.mrb[1].mxu0  ;;  %v575_v50 = vmax.f32 %v530_v47, 0.0  ;;  %v532_v51 = vpop.f32.mrb[1].mxu1 }
 0x16b   : > { %v560_v52 = vmax.f32 %v492_v49, 0.0  ;;  %v494_v53 = vpop.f32.mrb[2].mxu0  ;;  %v576_v54 = vmax.f32 %v532_v51, 0.0  ;;  %v534_v55 = vpop.f32.mrb[2].mxu1 }
 0x16c   : > { %587 = vst [vmem:[%s1268_s17] sm:$0xff] %v559_v48  ;;  %v561_v56 = vmax.f32 %v494_v53, 0.0  ;;  %v496_v57 = vpop.f32.mrb[3].mxu0  ;;  %603 = vst [vmem:[%s1268_s17 + $0x80] sm:$0xff] %v575_v50  ;;  %v577_v58 = vmax.f32 %v534_v55, 0.0  ;;  %v536_v59 = vpop.f32.mrb[3].mxu1 }
 0x16d   : > { %588 = vst [vmem:[%s1268_s17 + $0x8] sm:$0xff] %v560_v52  ;;  %v562_v60 = vmax.f32 %v496_v57, 0.0  ;;  %604 = vst [vmem:[%s1268_s17 + $0x88] sm:$0xff] %v576_v54  ;;  %v578_v61 = vmax.f32 %v536_v59, 0.0 }
 0x16e   : > { %589 = vst [vmem:[%s1268_s17 + $0x10] sm:$0xff] %v561_v56  ;;  %605 = vst [vmem:[%s1268_s17 + $0x90] sm:$0xff] %v577_v58 }
 0x16f   : > { %590 = vst [vmem:[%s1268_s17 + $0x18] sm:$0xff] %v562_v60  ;;  %606 = vst [vmem:[%s1268_s17 + $0x98] sm:$0xff] %v578_v61 }
 0x171   : > { %v500_v62 = vpop.f32.mrb[4].mxu0  ;;  %v540_v63 = vpop.f32.mrb[4].mxu1 }
 0x172   : > { %v563_v0 = vmax.f32 %v500_v62, 0.0  ;;  %v502_v1 = vpop.f32.mrb[5].mxu0  ;;  %v579_v2 = vmax.f32 %v540_v63, 0.0  ;;  %v542_v3 = vpop.f32.mrb[5].mxu1 }
 0x173   : > { %v564_v4 = vmax.f32 %v502_v1, 0.0  ;;  %v504_v5 = vpop.f32.mrb[6].mxu0  ;;  %v580_v6 = vmax.f32 %v542_v3, 0.0  ;;  %v544_v7 = vpop.f32.mrb[6].mxu1 }
 0x174   : > { %591 = vst [vmem:[%s1268_s17 + $0x20] sm:$0xff] %v563_v0  ;;  %v565_v8 = vmax.f32 %v504_v5, 0.0  ;;  %v506_v9 = vpop.f32.mrb[7].mxu0  ;;  %607 = vst [vmem:[%s1268_s17 + $0xa0] sm:$0xff] %v579_v2  ;;  %v581_v10 = vmax.f32 %v544_v7, 0.0  ;;  %v546_v11 = vpop.f32.mrb[7].mxu1 }
 0x175   : > { %592 = vst [vmem:[%s1268_s17 + $0x28] sm:$0xff] %v564_v4  ;;  %v566_v12 = vmax.f32 %v506_v9, 0.0  ;;  %608 = vst [vmem:[%s1268_s17 + $0xa8] sm:$0xff] %v580_v6  ;;  %v582_v13 = vmax.f32 %v546_v11, 0.0 }
 0x176   : > { %593 = vst [vmem:[%s1268_s17 + $0x30] sm:$0xff] %v565_v8  ;;  %609 = vst [vmem:[%s1268_s17 + $0xb0] sm:$0xff] %v581_v10 }
 0x177   : > { %594 = vst [vmem:[%s1268_s17 + $0x38] sm:$0xff] %v566_v12  ;;  %610 = vst [vmem:[%s1268_s17 + $0xb8] sm:$0xff] %v582_v13 }
 0x179   : > { %v510_v14 = vpop.f32.mrb[8].mxu0  ;;  %v550_v15 = vpop.f32.mrb[8].mxu1 }
 0x17a   : > { %v567_v16 = vmax.f32 %v510_v14, 0.0  ;;  %v512_v17 = vpop.f32.mrb[9].mxu0  ;;  %v583_v18 = vmax.f32 %v550_v15, 0.0  ;;  %v552_v19 = vpop.f32.mrb[9].mxu1 }
 0x17b   : > { %v568_v20 = vmax.f32 %v512_v17, 0.0  ;;  %v514_v21 = vpop.f32.mrb[10].mxu0  ;;  %v584_v22 = vmax.f32 %v552_v19, 0.0  ;;  %v554_v23 = vpop.f32.mrb[10].mxu1 }
 0x17c   : > { %595 = vst [vmem:[%s1268_s17 + $0x40] sm:$0xff] %v567_v16  ;;  %v569_v24 = vmax.f32 %v514_v21, 0.0  ;;  %v516_v25 = vpop.f32.mrb[11].mxu0  ;;  %611 = vst [vmem:[%s1268_s17 + $0xc0] sm:$0xff] %v583_v18  ;;  %v585_v26 = vmax.f32 %v554_v23, 0.0  ;;  %v556_v27 = vpop.f32.mrb[11].mxu1 }
 0x17d   : > { %596 = vst [vmem:[%s1268_s17 + $0x48] sm:$0xff] %v568_v20  ;;  %v570_v28 = vmax.f32 %v516_v25, 0.0  ;;  %612 = vst [vmem:[%s1268_s17 + $0xc8] sm:$0xff] %v584_v22  ;;  %v586_v29 = vmax.f32 %v556_v27, 0.0 }
 0x17e   : > { %597 = vst [vmem:[%s1268_s17 + $0x50] sm:$0xff] %v569_v24  ;;  %613 = vst [vmem:[%s1268_s17 + $0xd0] sm:$0xff] %v585_v26 }
 0x17f   : > { %598 = vst [vmem:[%s1268_s17 + $0x58] sm:$0xff] %v570_v28  ;;  %614 = vst [vmem:[%s1268_s17 + $0xd8] sm:$0xff] %v586_v29 }
 0x181   : > { %v520_v30 = vpop.f32.mrb[12].mxu0 }
 0x182   : > { %v571_v31 = vmax.f32 %v520_v30, 0.0  ;;  %v522_v32 = vpop.f32.mrb[13].mxu0 }
 0x183   : > { %v572_v33 = vmax.f32 %v522_v32, 0.0  ;;  %v524_v34 = vpop.f32.mrb[14].mxu0 }
 0x184   : > { %599 = vst [vmem:[%s1268_s17 + $0x60] sm:$0xff] %v571_v31  ;;  %v573_v35 = vmax.f32 %v524_v34, 0.0  ;;  %v526_v36 = vpop.f32.mrb[15].mxu0 }
 0x185   : > { %600 = vst [vmem:[%s1268_s17 + $0x68] sm:$0xff] %v572_v33  ;;  %v574_v37 = vmax.f32 %v526_v36, 0.0 }
 0x186   : > { %601 = vst [vmem:[%s1268_s17 + $0x70] sm:$0xff] %v573_v35 }
 0x187   : > { %602 = vst [vmem:[%s1268_s17 + $0x78] sm:$0xff] %v574_v37 }
 0x188   : > { %1013 = shalt.err (!%p1010_p7)
}
 0x189   : > { %s1014_s18 = scalar_lea.hbm %s1300_s27, 3584  ;;  %s1018_s23 = scalar_lea.hbm %s1351_s2, 7168 }
 0x18a   : > { %p1015_p9 = scmp.ne.s32.totalorder %s1300_s27, %s1014_s18  ;;  %p1019_p5 = scmp.lt.u32.totalorder %s1300_s27, %s1351_s2 }
 0x18b   : > { %p1020_p13 = scmp.lt.u32.totalorder %s1018_s23, %s1014_s18  ;;  %p1022_p4 = scmp.lt.u32.totalorder %s1014_s18, %s1300_s27 }
 0x18c   : > { %p1016_p1 = pnand %p1015_p9, %p1188_p12 }
 0x18d   : > { %p1021_p2 = por %p1020_p13, %p1019_p5 }
 0x18e   : > { %p1017_p0 = pneg %p1016_p1 }
 0x18f   : > { %p1023_p6 = por %p1022_p4, %p1021_p2 }
 0x191   : > { %p1024_p8 = pnand %p1023_p6, %p1017_p0 }
 0x193   : > { %1027 = shalt.err (!%p1024_p8)
}
 0x194   : > { %s1077_s3 = smov 256   ;;  %s1078_s15 = smov 16  }
 0x195   : > { %818 = dma.vmem_to_hbm [thread:$0]  (%p1188_p12), %s1302_s5, 3584, %s1300_s27, %s616_s13, %s1077_s3, %s1077_s3, %s1078_s15  }
 0x196 PF: > { %s645_s17 = sand.u32 1, %s1058_s9   ;;  %p1366_p10 = scmp.ne.s32.totalorder %s1356_s16, 0 }
 0x197   : > { %p1367_p11 = scmp.ge.s32.totalorder %s1070_s12, 2  ;;  %s646_s4 = scalar_lea.sflag [#allocation4], %s645_s17 }
 0x199   : > { %p829_p3 = pnand %p1367_p11, %p1366_p10 }
 0x19b   : > { %1053 = dma.done.wait (!%p829_p3), %s646_s4, 3584  }
 0x19c   : > { %1055 = vsyncadd (!%p829_p3), %s646_s4, 4294963712  ;;  %p16_p7 = scmp.ge.s32.totalorder %s1150_s21, 4   ;;  %s1368_s9 = smov %s1062_s10 }
 0x19d   : > { %s1369_s10 = smov %s1066_s11  ;;  %s1370_s11 = smov %s1184_s8 }
 0x19e   : > { %s1371_s12 = smov %s1150_s21  ;;  %18 = sbr.rel (!%p16_p7) target bundleno = 6 (0x6), region = 77 }
 0x1a5   :  { %651 = vsyncpa [#allocation3], 1 }
 0x1a6   :  { %653 = vsyncpa [#allocation3 + $0x1], 1 }
 0x1a7   :  { %654 = vsyncpa [#allocation6], 1 }
 0x1a8   :  { %655 = vsyncpa [#allocation4], 1 }
 0x1a9   :  { %657 = vsyncpa [#allocation4 + $0x1], 1 }

</bundles_post_ra>
